<compile_context>
chip_gen: v5e
topology: v5e:2x2
jax: 0.10.0
libtpu: 0.0.40
codegen_flags: <defaults>
</compile_context>

<pallas_src>
import math

import jax
import jax.numpy as jnp
from jax.experimental import pallas as pl
from jax.experimental.pallas import tpu as pltpu


def _round_up(x, m):
    return ((x + m - 1) // m) * m


# ---------------------------------------------------------------------------
# Kernel 1: routing function  (AdaptiveAvgPool2d(1) -> Linear -> Sigmoid)
# Tiled over batch: one (1, C_in, H*W) input slice per grid step.
# ---------------------------------------------------------------------------
def _route_kernel(x_ref, fcw_ref, fcb_ref, o_ref):
    # x_ref: (1, C_in, H*W)  fcw_ref: (C_in, K)  fcb_ref: (1, K)  o_ref: (1, 1, K)
    pooled = jnp.mean(x_ref[...].astype(jnp.float32), axis=2)              # (1, C_in)
    logits = jnp.dot(pooled, fcw_ref[...].astype(jnp.float32),
                     preferred_element_type=jnp.float32) + fcb_ref[...]    # (1, K)
    o_ref[0] = jax.nn.sigmoid(logits).astype(o_ref.dtype)


# ---------------------------------------------------------------------------
# Kernel 2: per-batch expert combination + conv-as-matmul (im2col GEMM)
# grid = (B, num_P_tiles); combined weight cached in VMEM scratch per batch.
# ---------------------------------------------------------------------------
def _condconv_kernel(routing_ref, w_ref, p_ref, o_ref, cw_ref):
    # routing_ref: SMEM (B, K) scalar-prefetched routing weights
    # w_ref: (K, C_out_p, Ckk_p) f32   p_ref: (1, TILE_P, Ckk_p) bf16
    # o_ref: (1, C_out_p, TILE_P) f32  cw_ref: VMEM (C_out_p, Ckk_p) bf16 scratch
    b = pl.program_id(0)
    num_experts = w_ref.shape[0]

    # Recompute the routing-weighted expert combination only on the first
    # spatial tile of each batch element (f32 accumulate, then cast once).
    @pl.when(pl.program_id(1) == 0)
    def _():
        combined = routing_ref[b, 0] * w_ref[0].astype(jnp.float32)
        for k in range(1, num_experts):
            combined = combined + routing_ref[b, k] * w_ref[k].astype(jnp.float32)
        cw_ref[...] = combined.astype(cw_ref.dtype)

    patches = p_ref[0].astype(cw_ref.dtype)                                # (TILE_P, Ckk_p)
    # (C_out_p, Ckk_p) @ (TILE_P, Ckk_p)^T  -> lane-dense (C_out_p, TILE_P)
    out = jax.lax.dot_general(cw_ref[...], patches,
                              (((1,), (1,)), ((), ())),
                              preferred_element_type=jnp.float32)
    o_ref[0] = out.astype(o_ref.dtype)


# ---------------------------------------------------------------------------
# Glue: im2col patch extraction (layout plumbing, not the hot path)
# ---------------------------------------------------------------------------
def _im2col(x, kh, kw, stride, padding):
    B, C, H, W = x.shape
    xp = jnp.pad(x, ((0, 0), (0, 0), (padding, padding), (padding, padding)))
    Ho = (H + 2 * padding - kh) // stride + 1
    Wo = (W + 2 * padding - kw) // stride + 1
    cols = []
    for i in range(kh):
        for j in range(kw):
            cols.append(xp[:, :, i:i + stride * Ho:stride, j:j + stride * Wo:stride])
    patches = jnp.stack(cols, axis=0).reshape(kh, kw, B, C, Ho, Wo)
    # feature ordering (C_in, kh, kw) matches weight.reshape(C_out, C_in*kh*kw)
    patches = patches.transpose(2, 4, 5, 3, 0, 1).reshape(B, Ho * Wo, C * kh * kw)
    return patches, Ho, Wo


# ---------------------------------------------------------------------------
# Wrapper (groups=1, bias=False — the module defaults)
# ---------------------------------------------------------------------------
def cond_conv_forward(x, weight, fc_w, fc_b, *, stride=1, padding=0,
                      compute_dtype=jnp.bfloat16, tile_p=512):
    B, C_in, H, W = x.shape
    K, C_out, _, kh, kw = weight.shape
    HW = H * W

    # 1) routing weights (tiled over batch)
    routing = pl.pallas_call(
        _route_kernel,
        out_shape=jax.ShapeDtypeStruct((B, 1, K), jnp.float32),
        grid=(B,),
        in_specs=[
            pl.BlockSpec((1, C_in, HW), lambda b: (b, 0, 0)),
            pl.BlockSpec((C_in, K), lambda b: (0, 0)),
            pl.BlockSpec((1, K), lambda b: (0, 0)),
        ],
        out_specs=pl.BlockSpec((1, 1, K), lambda b: (b, 0, 0)),
        compiler_params=pltpu.CompilerParams(dimension_semantics=("parallel",)),
    )(x.reshape(B, C_in, HW), fc_w, fc_b)
    routing = routing.reshape(B, K)

    # 2) conditional conv as per-batch, spatially-tiled GEMM
    patches, Ho, Wo = _im2col(x, kh, kw, stride, padding)          # (B, P, Ckk) f32
    P = Ho * Wo
    Ckk = C_in * kh * kw

    # TPU-friendly padded sizes: contraction dim -> multiple of 128 (lanes),
    # C_out -> multiple of 8 (sublanes), spatial tile -> multiple of 128.
    ckk_p = _round_up(Ckk, 128)
    c_out_p = _round_up(C_out, 8)
    tp = min(tile_p, _round_up(P, 128))
    p_pad = _round_up(P, tp)

    patches = patches.astype(compute_dtype)
    patches = jnp.pad(patches, ((0, 0), (0, p_pad - P), (0, ckk_p - Ckk)))
    w_flat = weight.reshape(K, C_out, Ckk).astype(jnp.float32)
    w_flat = jnp.pad(w_flat, ((0, 0), (0, c_out_p - C_out), (0, ckk_p - Ckk)))

    # Explicit VMEM budget: experts (double-buffered), 2x patch tile,
    # 2x output tile, combined-weight scratch, plus headroom.  Cap below the
    # v7x 64 MiB physical VMEM.
    itm = jnp.dtype(compute_dtype).itemsize
    need = (2 * K * c_out_p * ckk_p * 4
            + 2 * tp * ckk_p * itm
            + 2 * c_out_p * tp * 4
            + c_out_p * ckk_p * itm)
    vmem_limit = int(min(need + (16 << 20), 56 << 20))

    out = pl.pallas_call(
        _condconv_kernel,
        out_shape=jax.ShapeDtypeStruct((B, c_out_p, p_pad), jnp.float32),
        grid_spec=pltpu.PrefetchScalarGridSpec(
            num_scalar_prefetch=1,          # routing (B, K) lands in SMEM
            grid=(B, p_pad // tp),
            in_specs=[
                pl.BlockSpec((K, c_out_p, ckk_p), lambda b, pt, r: (0, 0, 0)),
                pl.BlockSpec((1, tp, ckk_p), lambda b, pt, r: (b, pt, 0)),
            ],
            out_specs=pl.BlockSpec((1, c_out_p, tp), lambda b, pt, r: (b, 0, pt)),
            scratch_shapes=[pltpu.VMEM((c_out_p, ckk_p), compute_dtype)],
        ),
        compiler_params=pltpu.CompilerParams(
            dimension_semantics=("parallel", "arbitrary"),
            vmem_limit_bytes=vmem_limit),
    )(routing, w_flat, patches)

    # (B, C_out_p, P_pad) -> slice padding -> NCHW (no transpose needed)
    out = out[:, :C_out, :P].reshape(B, C_out, Ho, Wo)
    return out, routing


# ---------------------------------------------------------------------------
# Pure-JAX reference (for correctness check)
# ---------------------------------------------------------------------------
def _reference(x, weight, fc_w, fc_b, stride, padding):
    B = x.shape[0]
    pooled = jnp.mean(x, axis=(2, 3))
    routing = jax.nn.sigmoid(pooled @ fc_w + fc_b[0])
    outs = []
    for b in range(B):
        wb = jnp.einsum('k,koihw->oihw', routing[b], weight)
        ob = jax.lax.conv_general_dilated(
            x[b:b + 1], wb, window_strides=(stride, stride),
            padding=[(padding, padding), (padding, padding)],
            dimension_numbers=('NCHW', 'OIHW', 'NCHW'))
        outs.append(ob[0])
    return jnp.stack(outs, axis=0)


if __name__ == "__main__":
    B, C_in, H, W = 2, 4, 16, 16
    C_out, ks, stride, padding = 8, 3, 1, 1
    num_experts = 3

    key = jax.random.PRNGKey(0)
    k1, k2, k3, k4 = jax.random.split(key, 4)

    x = jax.random.normal(k1, (B, C_in, H, W), jnp.float32)

    # kaiming_uniform_(a=sqrt(5)) on (K, C_out, C_in, kh, kw): fan_in = C_in*kh*kw
    fan_in = C_in * ks * ks
    w_bound = math.sqrt(2.0 / (1.0 + 5.0)) * math.sqrt(3.0 / fan_in)
    weight = jax.random.uniform(k2, (num_experts, C_out, C_in, ks, ks),
                                jnp.float32, -w_bound, w_bound)

    # nn.Linear(C_in, K) default init; store weight transposed as (C_in, K)
    fc_bound = 1.0 / math.sqrt(C_in)
    fc_w = jax.random.uniform(k3, (C_in, num_experts), jnp.float32, -fc_bound, fc_bound)
    fc_b = jax.random.uniform(k4, (1, num_experts), jnp.float32, -fc_bound, fc_bound)

    out, routing = cond_conv_forward(x, weight, fc_w, fc_b,
                                     stride=stride, padding=padding)
    out = jax.block_until_ready(out)

    ref = _reference(x, weight, fc_w, fc_b, stride, padding)
    assert out.shape == (B, C_out, H, W), out.shape
    # bf16 MXU inputs with f32 accumulation -> looser tolerance than pure f32.
    assert jnp.allclose(out, ref, atol=2e-2, rtol=2e-2), \
        float(jnp.max(jnp.abs(out - ref)))
    print("KERNEL_OK")
</pallas_src>

<mosaic_0001>
module attributes {stable_mosaic.version = 11 : i64} {
  func.func @_route_kernel(%arg0: i32, %arg1: memref<1x4x256xf32, #tpu.memory_space<vmem>>, %arg2: memref<4x3xf32, #tpu.memory_space<vmem>>, %arg3: memref<1x3xf32, #tpu.memory_space<vmem>>, %arg4: memref<1x1x3xf32, #tpu.memory_space<vmem>>) attributes {dimension_semantics = [#tpu.dimension_semantics<parallel>], iteration_bounds = array<i64: 2>, scalar_prefetch = 0 : i64, scratch_operands = 0 : i64, tpu.core_type = #tpu.core_type<tc>, window_params = [{transform_indices = @transform_0, window_bounds = array<i64: 1, 4, 256>}, {pipeline_mode = #tpu.pipeline_mode<synchronous>, transform_indices = @transform_1, window_bounds = array<i64: 4, 3>}, {pipeline_mode = #tpu.pipeline_mode<synchronous>, transform_indices = @transform_2, window_bounds = array<i64: 1, 3>}, {transform_indices = @transform_3, window_bounds = array<i64: 1, 1, 3>}]} {
    %c0 = arith.constant 0 : index
    %c0_0 = arith.constant 0 : index
    %c0_1 = arith.constant 0 : index
    %0 = vector.load %arg1[%c0, %c0_0, %c0_1] : memref<1x4x256xf32, #tpu.memory_space<vmem>>, vector<1x4x256xf32>
    %cst = arith.constant dense<0.000000e+00> : vector<1x4xf32>
    %1 = vector.multi_reduction <add>, %0, %cst [2] : vector<1x4x256xf32> to vector<1x4xf32>
    %cst_2 = arith.constant 2.560000e+02 : f32
    %2 = vector.broadcast %cst_2 : f32 to vector<1x4xf32>
    %3 = arith.divf %1, %2 : vector<1x4xf32>
    %c0_3 = arith.constant 0 : index
    %c0_4 = arith.constant 0 : index
    %4 = vector.load %arg2[%c0_3, %c0_4] : memref<4x3xf32, #tpu.memory_space<vmem>>, vector<4x3xf32>
    %cst_5 = arith.constant dense<0.000000e+00> : vector<1x3xf32>
    %5 = tpu.matmul %3, %4, %cst_5 {dimension_numbers = #tpu.dot_dimension_numbers<[1], [0], [0], [1], [0, 0, 1, 1], [], []>} : vector<1x4xf32>, vector<4x3xf32>, vector<1x3xf32> -> vector<1x3xf32>
    %c0_6 = arith.constant 0 : index
    %c0_7 = arith.constant 0 : index
    %6 = vector.load %arg3[%c0_6, %c0_7] : memref<1x3xf32, #tpu.memory_space<vmem>>, vector<1x3xf32>
    %7 = arith.addf %5, %6 : vector<1x3xf32>
    %8 = arith.negf %7 : vector<1x3xf32>
    %9 = math.exp %8 : vector<1x3xf32>
    %cst_8 = arith.constant 1.000000e+00 : f32
    %10 = vector.broadcast %cst_8 : f32 to vector<1x3xf32>
    %11 = arith.addf %10, %9 : vector<1x3xf32>
    %12 = arith.divf %10, %11 : vector<1x3xf32>
    %c0_9 = arith.constant 0 : index
    %c0_10 = arith.constant 0 : index
    %c0_11 = arith.constant 0 : index
    %13 = vector.load %arg4[%c0_9, %c0_10, %c0_11] : memref<1x1x3xf32, #tpu.memory_space<vmem>>, vector<1x1x3xf32>
    %14 = vector.shape_cast %13 : vector<1x1x3xf32> to vector<1x3xf32>
    %15 = vector.shape_cast %12 : vector<1x3xf32> to vector<1x1x3xf32>
    tpu.vector_store %arg4[%c0_9, %c0_10, %c0_11], %15 {strides = array<i32>} : memref<1x1x3xf32, #tpu.memory_space<vmem>>, vector<1x1x3xf32>,
    return
  }
  func.func @transform_0(%arg0: i32) -> (i32, i32, i32) {
    %c0_i32 = arith.constant 0 : i32
    %c0_i32_0 = arith.constant 0 : i32
    %c0_i32_1 = arith.constant 0 : i32
    return %arg0, %c0_i32, %c0_i32_0 : i32, i32, i32
  }
  func.func @transform_1(%arg0: i32) -> (i32, i32) {
    %c0_i32 = arith.constant 0 : i32
    %c0_i32_0 = arith.constant 0 : i32
    %c0_i32_1 = arith.constant 0 : i32
    return %c0_i32, %c0_i32_0 : i32, i32
  }
  func.func @transform_2(%arg0: i32) -> (i32, i32) {
    %c0_i32 = arith.constant 0 : i32
    %c0_i32_0 = arith.constant 0 : i32
    %c0_i32_1 = arith.constant 0 : i32
    return %c0_i32, %c0_i32_0 : i32, i32
  }
  func.func @transform_3(%arg0: i32) -> (i32, i32, i32) {
    %c0_i32 = arith.constant 0 : i32
    %c0_i32_0 = arith.constant 0 : i32
    %c0_i32_1 = arith.constant 0 : i32
    return %arg0, %c0_i32, %c0_i32_0 : i32, i32, i32
  }
}

</mosaic_0001>

<bundles_post_ra>
// kernel: tpu_custom_call.1
= control target key start
LH: loop header
LB: loop body
LE: loop exit
PB: predicated region body
PF: predicated region fallthrough
CT: control target
= control target key end

     0   :  { %8 = vsyncpa [#allocation3], 0  ;;  %s742_s0 = inlined_call_operand.hbm [shape: f32[2,4,256], index: 0, kind: input, shape index: {}]   ;;  %s743_s1 = inlined_call_operand.hbm [shape: f32[4,3], index: 1, kind: input, shape index: {}]   ;;  %s744_s2 = inlined_call_operand.vmem [shape: f32[1,3], index: 2, kind: input, shape index: {}]   ;;  %s745_s3 = inlined_call_operand.hbm [shape: f32[2,1,3], index: 3, kind: output, shape index: {}]  }
   0x1   :  { %10 = vsyncpa [#allocation3 + $0x1], 0 }
   0x2   :  { %11 = vsyncpa [#allocation6], 0 }
   0x3   :  { %12 = vsyncpa [#allocation4], 0 }
   0x4   :  { %14 = vsyncpa [#allocation4 + $0x1], 0  ;;  %s600_s12 = smov 0   ;;  %s602_s13 = smov 0  }
   0x5   :  { %s604_s14 = smov 0   ;;  %s606_s15 = smov 0  }
   0x6 LB: > { %s621_s16 = sadd.s32 4294967295, %s576_s15   ;;  %s366_s17 = sadd.s32 4294967294, %s576_s15   ;;  %s576_s15 = sphi %s606_s15, %s755_s15   ;;  %s572_s14 = sphi %s604_s14, %s754_s14   ;;  %s568_s13 = sphi %s602_s13, %s753_s13   ;;  %s564_s12 = sphi %s600_s12, %s752_s12  }
   0x7   : > { %p40_p0 = scmp.ne.s32.totalorder %s568_s13, %s564_s12  ;;  %p41_p1 = scmp.eq.s32.totalorder %s621_s16, 0 }
   0x8   : > { %p106_p2 = scmp.eq.s32.totalorder %s621_s16, 1  ;;  %p112_p3 = scmp.eq.s32.totalorder %s366_s17, 1 }
   0x9   : > { %p630_p4 = por %p41_p1, %p40_p0  ;;  %p367_p5 = scmp.ge.s32.totalorder %s576_s15, 1 }
   0xa   : > { %p635_p6 = por %p112_p3, %p40_p0  ;;  %p119_p7 = scmp.lt.s32.totalorder %s576_s15, 3 }
   0xb   : > { %s131_s22 = sshll.u32 %s743_s1, 4  ;;  %s578_s24 = smov [#allocation5]   ;;  %s132_s22 = int_to_ptr.hbm [resolvable:$true] %s131_s22 }
   0xc   : > { %p643_p8 = pnand %p367_p5, %p119_p7  ;;  %s133_s25 = sshll.u32 %s578_s24, 4  ;;  %s134_s25 = int_to_ptr.vmem [resolvable:$true] %s133_s25 }
   0xd   : > { %s653_s26 = sadd.s32 1, %s576_s15   ;;  %s27_s27 = sadd.s32 1, %s572_s14 }
   0xe   : > { %p390_p10 = pneg %p643_p8  ;;  %s24_s28 = ssub.s32 %s576_s15, %s653_s26 }
   0xf   : > { %p25_p12 = scmp.eq.s32.totalorder %s24_s28, 0  ;;  %p34_p13 = scmp.ne.s32.totalorder %s572_s14, %s568_s13 }
  0x10   : > { %p391_p11 = pnand %p390_p10, %p41_p1  ;;  %p35_p0 = scmp.eq.s32.totalorder %s576_s15, 0 }
  0x11   : > { %s662_s29 = scalar_select %p25_p12, %s572_s14, %s27_s27  }
  0x12   : > { %393 = dma.hbm_to_vmem [thread:$0]  (!%p391_p11), %s132_s22, 64, %s134_s25, [#allocation6]  }
  0x13   : > { %p666_p3 = por %p106_p2, %p34_p13  ;;  %p403_p5 = scmp.lt.s32.totalorder %s576_s15, 2 }
  0x14   : > { %s147_s4 = sand.u32 1, %s572_s14   ;;  %s381_s5 = sshll.u32 %s576_s15, 3 }
  0x15   : > { %p36_p7 = por %p35_p0, %p34_p13  ;;  %s370_s6 = sshll.u32 %s147_s4, 3 }
  0x16   : > { %s156_s9 = scalar_lea.hbm %s742_s0, %s381_s5  ;;  %s151_s11 = scalar_lea.vmem [#allocation2], %s370_s6 }
  0x17   : > { %s158_s10 = sshll.u32 %s156_s9, 4  ;;  %s160_s17 = sshll.u32 %s151_s11, 4  ;;  %s159_s10 = int_to_ptr.hbm [resolvable:$true] %s158_s10  ;;  %s161_s17 = int_to_ptr.vmem [resolvable:$true] %s160_s17 }
  0x18   : > { %p676_p10 = pnand %p403_p5, %p36_p7  ;;  %s148_s21 = scalar_lea.sflag [#allocation3], %s147_s4 }
  0x19   : > { %s476_s22 = sshra.s32 %s159_s10, 4  ;;  %s483_s28 = scalar_lea.hbm %s742_s0, 16  ;;  %s477_s22 = int_to_ptr.hbm [resolvable:$true] %s476_s22 }
  0x1a   : > { %s478_s24 = scalar_lea.hbm %s477_s22, 8  ;;  %p480_p11 = pneg %p676_p10 }
  0x1b   : > { %p479_p2 = scmp.ne.s32.totalorder %s477_s22, %s478_s24  ;;  %p484_p0 = scmp.lt.s32.totalorder %s477_s22, %s742_s0 }
  0x1c   : > { %p485_p5 = scmp.lt.s32.totalorder %s483_s28, %s478_s24 }
  0x1d   : > { %p481_p12 = pnand %p480_p11, %p479_p2 }
  0x1e   : > { %p486_p7 = por %p485_p5, %p484_p0 }
  0x1f   : > { %p482_p13 = pneg %p481_p12 }
  0x21   : > { %p487_p9 = pnand %p486_p7, %p482_p13 }
  0x23   : > { %490 = shalt.err (!%p487_p9)
}
  0x24   : > { %397 = dma.hbm_to_vmem [thread:$0]  (!%p676_p10), %s159_s10, 128, %s161_s17, %s148_s21  }
  0x25   : > { %169 = sbr.rel (%p643_p8) target bundleno = 336 (0x150), region = 32  ;;  %s693_s4 = sand.u32 (!%p643_p8), 1, %s568_s13  }
  0x26   : > { %s374_s7 = sshll.u32 (!%p643_p8), %s693_s4, 3  ;;  %s172_s8 = scalar_lea.sflag (!%p643_p8), [#allocation3], %s693_s4 }
  0x27   : > { %s175_s9 = scalar_lea.vmem (!%p643_p8), [#allocation2], %s374_s7 }
  0x2a   : > { %551 = dma.done.wait (%p630_p4), %s172_s8, 128  }
  0x2b   : > { %553 = vsyncadd (%p630_p4), %s172_s8, 4294967168 }
  0x2c   : > { %555 = dma.done.wait (%p41_p1), [#allocation6], 64  }
  0x2d   : > { %557 = vsyncadd (%p41_p1), [#allocation6], 4294967232  ;;  %v203_v0 = vld [vmem:[%s175_s9] sm:$0xff]  ;;  %vm210_vm0 = vcmask 1043456   ;;  %v224_v6 = vld [vmem:[#allocation5] sm:$0xf]  ;;  %v227_v13 = vlaneseq  ;;  %s286_s17 = scalar_lea.hbm %s745_s3, %s621_s16 }
  0x2e   : > { %205 = vst [vmem:[#allocation1] ss:$2 sm:$0xff] %v203_v0  ;;  %376 = vmatpush.msk.msra.mxu0 %vm210_vm0, %v224_v6  ;;  %v579_v7 = vmov 256.0   ;;  %vm230_vm2 = vcmask 31744   ;;  %v225_v19 = vld [vmem:[%s744_s2] sm:$0x1] }
  0x2f   : > { %440 = vrcp.f32 %v579_v7  ;;  %v228_v15 = vand.u32 127, %v227_v13  ;;  %s202_s20 = scalar_lea.vmem [#allocation7], %s693_s4  ;;  %s290_s22 = sshll.u32 %s286_s17, 4  ;;  %vm275_vm6 = vcmask 16384   ;;  %s291_s22 = int_to_ptr.hbm [resolvable:$true] %s290_s22 }
  0x30   : > { %s288_s21 = sshll.u32 %s202_s20, 4  ;;  %s278_s16 = scalar_lea.sflag [#allocation4], %s693_s4  ;;  %s289_s21 = int_to_ptr.vmem [resolvable:$true] %s288_s21 }
  0x31   : > { %s520_s24 = sshra.s32 %s291_s22, 4  ;;  %s526_s5 = scalar_lea.hbm %s745_s3, 2  ;;  %s521_s24 = int_to_ptr.hbm [resolvable:$true] %s520_s24 }
  0x32   : > { %s522_s25 = scalar_lea.hbm %s521_s24, 1  ;;  %p527_p9 = scmp.lt.s32.totalorder %s521_s24, %s745_s3 }
  0x33   : > { %p523_p1 = scmp.ne.s32.totalorder %s521_s24, %s522_s25  ;;  %p528_p10 = scmp.lt.s32.totalorder %s526_s5, %s522_s25 }
  0x35   : > { %v206_v1 = vld.sshfl [vmem:[#allocation1] sm:$0xff pattern:$0x75316420]  ;;  %v207_v2 = vld.sshfl [vmem:[#allocation1 + $0x8] sm:$0xff pattern:$0x75316420]  ;;  %v441_v8 = vpop.eup %440  ;;  %p524_p4 = pnand %p523_p1, %p666_p3  ;;  %p529_p2 = por %p528_p10, %p527_p9 }
  0x36   : > { %v211_v3 = vsel %vm210_vm0, %v206_v1, 0.0  ;;  %v212_v4 = vsel %vm210_vm0, %v207_v2, 0.0  ;;  %v217_v9 = vmul.f32 256.0, %v441_v8  ;;  %vm221_vm1 = vweird.f32 %v441_v8 }
  0x37   : > { %v213_v5 = vadd.f32 %v212_v4, %v211_v3  ;;  %p525_p8 = pneg %p524_p4 }
  0x38   : > { %v218_v10 = vsub.f32 1.0, %v217_v9 }
  0x39   : > { %214 = vadd.xlane.f32.xlu0 %v213_v5  ;;  %p530_p11 = pnand %p529_p2, %p525_p8 }
  0x3a   : > { %v219_v11 = vmul.f32 %v441_v8, %v218_v10 }
  0x3c   : > { %v220_v12 = vadd.f32 %v441_v8, %v219_v11 }
  0x3e   : > { %v222_v14 = vsel %vm221_vm1, %v441_v8, %v220_v12 }
  0xac   : > { %v215_v16 = vpop.xlane.xlu0 %214 }
  0xad   : > { %v223_v17 = vmul.f32 %v222_v14, %v215_v16 }
  0xaf   : > { %v229_v18 = vperm.slane %v223_v17, %v228_v15 }
  0xb1   : > { %377 = vmatmul.msk.f32.vlgmr.msra.gmra.mxu0 %vm230_vm2, %v229_v18 }
 0x12e   : > { %v253_v20 = vpop.f32.mrf.mxu0 }
 0x12f   : > { %v254_v21 = vadd.f32 %v253_v20, %v225_v19 }
 0x131   : > { %v378_v22 = vmul.f32 -1.442695, %v254_v21 }
 0x133   : > { %442 = vpow2.f32 %v378_v22 }
 0x139   : > { %v443_v23 = vpop.eup %442 }
 0x13a   : > { %v259_v24 = vadd.f32 1.0, %v443_v23 }
 0x13c   : > { %444 = vrcp.f32 %v259_v24  ;;  %v271_v28 = vand.u32 2147483648, %v259_v24  ;;  %v269_v30 = vand.u32 2147483647, %v259_v24  ;;  %vm265_vm4 = vweird.f32 %v259_v24 }
 0x13e   : > { %v272_v32 = vor.u32 1.1754944e-38, %v271_v28  ;;  %vm270_vm7 = vcmp.eq.f32.partialorder %v269_v30, 8.507059e+37 }
 0x142   : > { %v445_v25 = vpop.eup %444 }
 0x143   : > { %v261_v26 = vmul.f32 %v445_v25, %v259_v24  ;;  %vm266_vm3 = vweird.f32 %v445_v25 }
 0x144   : > { %vm267_vm5 = vmor %vm265_vm4, %vm266_vm3 }
 0x145   : > { %v262_v27 = vsub.f32 1.0, %v261_v26 }
 0x147   : > { %v263_v29 = vmul.f32 %v445_v25, %v262_v27 }
 0x149   : > { %v264_v31 = vadd.f32 %v445_v25, %v263_v29 }
 0x14b   : > { %v268_v33 = vsel %vm267_vm5, %v445_v25, %v264_v31 }
 0x14c   : > { %v273_v34 = vsel %vm270_vm7, %v272_v32, %v268_v33 }
 0x14d   : > { %276 = vst.msk [vmem:[%s202_s20] sm:$0x1] %vm275_vm6, %v273_v34 }
 0x14e   : > { %533 = shalt.err (!%p530_p11)
}
 0x14f   : > { %388 = dma.vmem_to_hbm [thread:$0]  (%p666_p3), %s289_s21, 16, %s291_s22, %s278_s16  }
 0x150 PF: > { %s302_s4 = sand.u32 1, %s564_s12   ;;  %p751_p12 = scmp.ge.s32.totalorder %s576_s15, 2 }
 0x151   : > { %s303_s8 = scalar_lea.sflag [#allocation4], %s302_s4 }
 0x152   : > { %p399_p13 = pnand %p751_p12, %p635_p6 }
 0x154   : > { %p400_p0 = pneg %p399_p13 }
 0x156   : > { %559 = dma.done.wait (%p400_p0), %s303_s8, 16  }
 0x157   : > { %561 = vsyncadd (%p400_p0), %s303_s8, 4294967280  ;;  %p17_p5 = scmp.ge.s32.totalorder %s653_s26, 4   ;;  %s752_s12 = smov %s568_s13 }
 0x158   : > { %s753_s13 = smov %s572_s14  ;;  %s754_s14 = smov %s662_s29 }
 0x159   : > { %s755_s15 = smov %s653_s26  ;;  %19 = sbr.rel (!%p17_p5) target bundleno = 6 (0x6), region = 81 }
 0x15e   :  { %308 = vsyncpa [#allocation3], 1 }
 0x15f   :  { %310 = vsyncpa [#allocation3 + $0x1], 1 }
 0x160   :  { %311 = vsyncpa [#allocation6], 1 }
 0x161   :  { %312 = vsyncpa [#allocation4], 1 }
 0x162   :  { %314 = vsyncpa [#allocation4 + $0x1], 1 }

</bundles_post_ra>
